<compile_context>
chip_gen: v7x
topology: tpu7x:2x2x1
jax: 0.10.0
libtpu: 0.0.40
codegen_flags: <defaults>
</compile_context>

<pallas_src>
import functools

import jax
import jax.numpy as jnp
from jax.experimental import pallas as pl
from jax.experimental.pallas import tpu as pltpu

LANE = 128
SUBLANE = 8
_HIGHEST = jax.lax.Precision.HIGHEST


def _round_up(n, m):
    return ((n + m - 1) // m) * m


def qnetwork_kernel(x_ref, w1_ref, b1_ref, w2_ref, b2_ref, w3_ref, b3_ref, out_ref):
    """One batch tile: fc1+ReLU -> fc2+ReLU -> fc3; h1/h2 never leave VMEM."""
    x = x_ref[...]                                                        # (tb, S)
    h1 = jnp.dot(x, w1_ref[...], preferred_element_type=jnp.float32,
                 precision=_HIGHEST) + b1_ref[...]
    h1 = jnp.maximum(h1, 0.0)                                             # (tb, Hp)
    h2 = jnp.dot(h1, w2_ref[...], preferred_element_type=jnp.float32,
                 precision=_HIGHEST) + b2_ref[...]
    h2 = jnp.maximum(h2, 0.0)                                             # (tb, Hp)
    out = jnp.dot(h2, w3_ref[...], preferred_element_type=jnp.float32,
                  precision=_HIGHEST) + b3_ref[...]
    out_ref[...] = out.astype(out_ref.dtype)                              # (tb, A)


def prepare_params(params):
    """Zero-pad ONLY the hidden feature dim to 128 lanes (done once, exact math).

    Padded hidden columns get bias 0 -> relu(0)=0, and the corresponding rows
    of the next weight matrix are zero, so they contribute nothing.  The state
    dim and action dim are left unpadded.
    """
    w1, b1 = params["w1"], params["b1"]
    w2, b2 = params["w2"], params["b2"]
    w3, b3 = params["w3"], params["b3"]
    S, H = w1.shape
    A = w3.shape[1]
    Hp = _round_up(H, LANE)

    def pad2(a, rows, cols):
        return jnp.pad(a, ((0, rows - a.shape[0]), (0, cols - a.shape[1])))

    return {
        "w1": pad2(w1, S, Hp), "b1": pad2(b1.reshape(1, -1), 1, Hp),
        "w2": pad2(w2, Hp, Hp), "b2": pad2(b2.reshape(1, -1), 1, Hp),
        "w3": pad2(w3, Hp, A), "b3": b3.reshape(1, A),
    }


@functools.partial(jax.jit, static_argnames=("tile_b",))
def qnetwork_forward(x, prepared, tile_b=2048):
    """Fused Pallas forward.  x: (B, state_dim) f32 -> (B, action_dim) f32."""
    w1, b1 = prepared["w1"], prepared["b1"]
    w2, b2 = prepared["w2"], prepared["b2"]
    w3, b3 = prepared["w3"], prepared["b3"]

    B, S = x.shape
    Hp = w1.shape[1]
    A = w3.shape[1]

    # Batch tile: >= 8 sublanes, <= ceil(B/2) (so big batches keep >= 2 grid
    # steps for v7x dual-TC sharding), <= tile_b to bound VMEM on v5e.
    tb_cap = _round_up(max((B + 1) // 2, SUBLANE), SUBLANE)
    tb = min(tile_b, tb_cap)
    B_pad = _round_up(B, tb)
    if B_pad != B:
        x = jnp.pad(x, ((0, B_pad - B), (0, 0)))
    grid = (B_pad // tb,)

    flops = 2 * B_pad * (S * Hp + Hp * Hp + Hp * A)
    bytes_accessed = 4 * (B_pad * S + B_pad * A          # activations in / Q-values out
                          + S * Hp + Hp                  # w1, b1 (DMA'd once)
                          + Hp * Hp + Hp                 # w2, b2
                          + Hp * A + A)                  # w3, b3

    const = lambda i: (0, 0)  # same block every step -> fetched once, stays resident
    out = pl.pallas_call(
        qnetwork_kernel,
        out_shape=jax.ShapeDtypeStruct((B_pad, A), jnp.float32),
        grid=grid,
        in_specs=[
            pl.BlockSpec((tb, S), lambda i: (i, 0)),   # activations stream over batch
            pl.BlockSpec((S, Hp), const),
            pl.BlockSpec((1, Hp), const),
            pl.BlockSpec((Hp, Hp), const),
            pl.BlockSpec((1, Hp), const),
            pl.BlockSpec((Hp, A), const),
            pl.BlockSpec((1, A), const),
        ],
        out_specs=pl.BlockSpec((tb, A), lambda i: (i, 0)),   # narrow, unpadded output
        compiler_params=pltpu.CompilerParams(
            dimension_semantics=("parallel",)),              # v7x: tiles across 2 TCs
        cost_estimate=pl.CostEstimate(
            flops=flops, transcendentals=0, bytes_accessed=bytes_accessed),
    )(x, w1, b1, w2, b2, w3, b3)

    return out if B_pad == B else out[:B]


@jax.jit
def _qnetwork_forward_jnp(x, prepared):
    """Plain-XLA path for tiny act()-style batches (Pallas launch overhead dominates)."""
    h1 = jnp.maximum(jnp.dot(x, prepared["w1"], precision=_HIGHEST) + prepared["b1"], 0.0)
    h2 = jnp.maximum(jnp.dot(h1, prepared["w2"], precision=_HIGHEST) + prepared["b2"], 0.0)
    return jnp.dot(h2, prepared["w3"], precision=_HIGHEST) + prepared["b3"]


def qnetwork_apply(x, prepared, small_batch_threshold=16, tile_b=2048):
    """Dispatcher: tiny batches -> fused XLA matmuls; replay batches -> Pallas kernel."""
    if x.shape[0] <= small_batch_threshold:
        return _qnetwork_forward_jnp(x, prepared)
    return qnetwork_forward(x, prepared, tile_b=tile_b)


def init_params(key, state_dim, action_dim, hidden_dim=64):
    """PyTorch nn.Linear-style init: U(+/- 1/sqrt(fan_in)); W stored as (in, out)."""
    def linear(k, fan_in, fan_out):
        kw, kb = jax.random.split(k)
        bound = 1.0 / jnp.sqrt(fan_in)
        w = jax.random.uniform(kw, (fan_in, fan_out), jnp.float32, -bound, bound)
        b = jax.random.uniform(kb, (1, fan_out), jnp.float32, -bound, bound)
        return w, b

    k1, k2, k3 = jax.random.split(key, 3)
    w1, b1 = linear(k1, state_dim, hidden_dim)
    w2, b2 = linear(k2, hidden_dim, hidden_dim)
    w3, b3 = linear(k3, hidden_dim, action_dim)
    return {"w1": w1, "b1": b1, "w2": w2, "b2": b2, "w3": w3, "b3": b3}


def reference_forward(x, p):
    h1 = jnp.maximum(jnp.dot(x, p["w1"], precision=_HIGHEST) + p["b1"], 0.0)
    h2 = jnp.maximum(jnp.dot(h1, p["w2"], precision=_HIGHEST) + p["b2"], 0.0)
    return jnp.dot(h2, p["w3"], precision=_HIGHEST) + p["b3"]


if __name__ == "__main__":
    key = jax.random.PRNGKey(0)
    k_params, k_x_small, k_x_big = jax.random.split(key, 3)

    state_dim, action_dim, hidden_dim = 8, 4, 64
    params = init_params(k_params, state_dim, action_dim, hidden_dim)
    prepared = prepare_params(params)

    # Small batch (the DQN act() query): run the Pallas kernel directly once
    # to validate it, then check the dispatcher's jnp fast path.
    x_small = jax.random.normal(k_x_small, (2, state_dim), jnp.float32)
    out_small = qnetwork_forward(x_small, prepared)            # Pallas kernel
    jax.block_until_ready(out_small)
    ref_small = reference_forward(x_small, params)
    assert out_small.shape == (2, action_dim)
    assert jnp.allclose(out_small, ref_small, atol=1e-3, rtol=1e-3)

    out_small2 = qnetwork_apply(x_small, prepared)             # jnp fast path (B<=16)
    jax.block_until_ready(out_small2)
    assert jnp.allclose(out_small2, ref_small, atol=1e-3, rtol=1e-3)

    # Replay-buffer-style batch: Pallas path, 2 grid steps, resident weights.
    big_batch = 1024
    x_big = jax.random.normal(k_x_big, (big_batch, state_dim), jnp.float32)
    out_big = qnetwork_apply(x_big, prepared)                  # Pallas kernel
    jax.block_until_ready(out_big)
    ref_big = reference_forward(x_big, params)
    assert out_big.shape == (big_batch, action_dim)
    assert jnp.allclose(out_big, ref_big, atol=1e-3, rtol=1e-3)

    print("KERNEL_OK")
</pallas_src>

<mosaic_0001>
module attributes {stable_mosaic.version = 11 : i64} {
  func.func @qnetwork_kernel(%arg0: i32, %arg1: memref<8x8xf32, #tpu.memory_space<vmem>>, %arg2: memref<8x128xf32, #tpu.memory_space<vmem>>, %arg3: memref<1x128xf32, #tpu.memory_space<vmem>>, %arg4: memref<128x128xf32, #tpu.memory_space<vmem>>, %arg5: memref<1x128xf32, #tpu.memory_space<vmem>>, %arg6: memref<128x4xf32, #tpu.memory_space<vmem>>, %arg7: memref<1x4xf32, #tpu.memory_space<vmem>>, %arg8: memref<8x4xf32, #tpu.memory_space<vmem>>) attributes {dimension_semantics = [#tpu.dimension_semantics<parallel>], iteration_bounds = array<i64: 1>, scalar_prefetch = 0 : i64, scratch_operands = 0 : i64, tpu.core_type = #tpu.core_type<tc>, window_params = [{transform_indices = @transform_0, window_bounds = array<i64: 8, 8>}, {pipeline_mode = #tpu.pipeline_mode<synchronous>, transform_indices = @transform_1, window_bounds = array<i64: 8, 128>}, {pipeline_mode = #tpu.pipeline_mode<synchronous>, transform_indices = @transform_2, window_bounds = array<i64: 1, 128>}, {pipeline_mode = #tpu.pipeline_mode<synchronous>, transform_indices = @transform_3, window_bounds = array<i64: 128, 128>}, {pipeline_mode = #tpu.pipeline_mode<synchronous>, transform_indices = @transform_4, window_bounds = array<i64: 1, 128>}, {pipeline_mode = #tpu.pipeline_mode<synchronous>, transform_indices = @transform_5, window_bounds = array<i64: 128, 4>}, {pipeline_mode = #tpu.pipeline_mode<synchronous>, transform_indices = @transform_6, window_bounds = array<i64: 1, 4>}, {transform_indices = @transform_7, window_bounds = array<i64: 8, 4>}]} {
    %c0 = arith.constant 0 : index
    %c0_0 = arith.constant 0 : index
    %0 = vector.load %arg1[%c0, %c0_0] : memref<8x8xf32, #tpu.memory_space<vmem>>, vector<8x8xf32>
    %c0_1 = arith.constant 0 : index
    %c0_2 = arith.constant 0 : index
    %1 = vector.load %arg2[%c0_1, %c0_2] : memref<8x128xf32, #tpu.memory_space<vmem>>, vector<8x128xf32>
    %cst = arith.constant dense<0.000000e+00> : vector<8x128xf32>
    %2 = tpu.matmul %0, %1, %cst {dimension_numbers = #tpu.dot_dimension_numbers<[1], [0], [0], [1], [0, 0, 1, 1], [], []>, precision = #tpu.contract_precision<fp32>} : vector<8x8xf32>, vector<8x128xf32>, vector<8x128xf32> -> vector<8x128xf32>
    %c0_3 = arith.constant 0 : index
    %c0_4 = arith.constant 0 : index
    %3 = vector.load %arg3[%c0_3, %c0_4] : memref<1x128xf32, #tpu.memory_space<vmem>>, vector<1x128xf32>
    %4 = vector.broadcast %3 : vector<1x128xf32> to vector<8x128xf32>
    %5 = arith.addf %2, %4 : vector<8x128xf32>
    %cst_5 = arith.constant 0.000000e+00 : f32
    %6 = vector.broadcast %cst_5 : f32 to vector<8x128xf32>
    %7 = arith.maximumf %5, %6 : vector<8x128xf32>
    %c0_6 = arith.constant 0 : index
    %c0_7 = arith.constant 0 : index
    %8 = vector.load %arg4[%c0_6, %c0_7] : memref<128x128xf32, #tpu.memory_space<vmem>>, vector<128x128xf32>
    %cst_8 = arith.constant dense<0.000000e+00> : vector<8x128xf32>
    %9 = tpu.matmul %7, %8, %cst_8 {dimension_numbers = #tpu.dot_dimension_numbers<[1], [0], [0], [1], [0, 0, 1, 1], [], []>, precision = #tpu.contract_precision<fp32>} : vector<8x128xf32>, vector<128x128xf32>, vector<8x128xf32> -> vector<8x128xf32>
    %c0_9 = arith.constant 0 : index
    %c0_10 = arith.constant 0 : index
    %10 = vector.load %arg5[%c0_9, %c0_10] : memref<1x128xf32, #tpu.memory_space<vmem>>, vector<1x128xf32>
    %11 = vector.broadcast %10 : vector<1x128xf32> to vector<8x128xf32>
    %12 = arith.addf %9, %11 : vector<8x128xf32>
    %cst_11 = arith.constant 0.000000e+00 : f32
    %13 = vector.broadcast %cst_11 : f32 to vector<8x128xf32>
    %14 = arith.maximumf %12, %13 : vector<8x128xf32>
    %c0_12 = arith.constant 0 : index
    %c0_13 = arith.constant 0 : index
    %15 = vector.load %arg6[%c0_12, %c0_13] : memref<128x4xf32, #tpu.memory_space<vmem>>, vector<128x4xf32>
    %cst_14 = arith.constant dense<0.000000e+00> : vector<8x4xf32>
    %16 = tpu.matmul %14, %15, %cst_14 {dimension_numbers = #tpu.dot_dimension_numbers<[1], [0], [0], [1], [0, 0, 1, 1], [], []>, precision = #tpu.contract_precision<fp32>} : vector<8x128xf32>, vector<128x4xf32>, vector<8x4xf32> -> vector<8x4xf32>
    %c0_15 = arith.constant 0 : index
    %c0_16 = arith.constant 0 : index
    %17 = vector.load %arg7[%c0_15, %c0_16] : memref<1x4xf32, #tpu.memory_space<vmem>>, vector<1x4xf32>
    %18 = vector.broadcast %17 : vector<1x4xf32> to vector<8x4xf32>
    %19 = arith.addf %16, %18 : vector<8x4xf32>
    %c0_17 = arith.constant 0 : index
    %c0_18 = arith.constant 0 : index
    %20 = vector.load %arg8[%c0_17, %c0_18] : memref<8x4xf32, #tpu.memory_space<vmem>>, vector<8x4xf32>
    tpu.vector_store %arg8[%c0_17, %c0_18], %19 {strides = array<i32>} : memref<8x4xf32, #tpu.memory_space<vmem>>, vector<8x4xf32>,
    return
  }
  func.func @transform_0(%arg0: i32) -> (i32, i32) {
    %c0_i32 = arith.constant 0 : i32
    %c0_i32_0 = arith.constant 0 : i32
    return %arg0, %c0_i32 : i32, i32
  }
  func.func @transform_1(%arg0: i32) -> (i32, i32) {
    %c0_i32 = arith.constant 0 : i32
    %c0_i32_0 = arith.constant 0 : i32
    %c0_i32_1 = arith.constant 0 : i32
    return %c0_i32, %c0_i32_0 : i32, i32
  }
  func.func @transform_2(%arg0: i32) -> (i32, i32) {
    %c0_i32 = arith.constant 0 : i32
    %c0_i32_0 = arith.constant 0 : i32
    %c0_i32_1 = arith.constant 0 : i32
    return %c0_i32, %c0_i32_0 : i32, i32
  }
  func.func @transform_3(%arg0: i32) -> (i32, i32) {
    %c0_i32 = arith.constant 0 : i32
    %c0_i32_0 = arith.constant 0 : i32
    %c0_i32_1 = arith.constant 0 : i32
    return %c0_i32, %c0_i32_0 : i32, i32
  }
  func.func @transform_4(%arg0: i32) -> (i32, i32) {
    %c0_i32 = arith.constant 0 : i32
    %c0_i32_0 = arith.constant 0 : i32
    %c0_i32_1 = arith.constant 0 : i32
    return %c0_i32, %c0_i32_0 : i32, i32
  }
  func.func @transform_5(%arg0: i32) -> (i32, i32) {
    %c0_i32 = arith.constant 0 : i32
    %c0_i32_0 = arith.constant 0 : i32
    %c0_i32_1 = arith.constant 0 : i32
    return %c0_i32, %c0_i32_0 : i32, i32
  }
  func.func @transform_6(%arg0: i32) -> (i32, i32) {
    %c0_i32 = arith.constant 0 : i32
    %c0_i32_0 = arith.constant 0 : i32
    %c0_i32_1 = arith.constant 0 : i32
    return %c0_i32, %c0_i32_0 : i32, i32
  }
  func.func @transform_7(%arg0: i32) -> (i32, i32) {
    %c0_i32 = arith.constant 0 : i32
    %c0_i32_0 = arith.constant 0 : i32
    return %arg0, %c0_i32 : i32, i32
  }
}

</mosaic_0001>

<bundles_post_ra>
// kernel: qnetwork_forward.1
= control target key start
LH: loop header
LB: loop body
LE: loop exit
PB: predicated region body
PF: predicated region fallthrough
CT: control target
= control target key end

     0   :  { %vm35_vm0 = vcmask 64512   ;;  %v2813_v0 = vmov 0.0   ;;  %vm2814_vm1 = vmmov 0   ;;  %v2815_v32 = vmov 0.0|0.0   ;;  %s3527_s1 = inlined_call_operand.vmem [shape: f32[8,128], index: 1, kind: input, shape index: {}]   ;;  %s3528_s0 = inlined_call_operand.vmem [shape: f32[8,8], index: 0, kind: input, shape index: {}]   ;;  %s3529_s3 = inlined_call_operand.vmem [shape: f32[128,128], index: 3, kind: input, shape index: {}]   ;;  %s3530_s2 = inlined_call_operand.vmem [shape: f32[1,128], index: 2, kind: input, shape index: {}]   ;;  %s3531_s5 = inlined_call_operand.vmem [shape: f32[128,4], index: 5, kind: input, shape index: {}]   ;;  %s3532_s4 = inlined_call_operand.vmem [shape: f32[1,128], index: 4, kind: input, shape index: {}]   ;;  %s3533_s6 = inlined_call_operand.vmem [shape: f32[1,4], index: 6, kind: input, shape index: {}]   ;;  %s3534_s7 = inlined_call_operand.vmem [shape: f32[8,4], index: 7, kind: output, shape index: {}]  }
   0x1   :  { %2055 = vmatprep.subr.mxu0 %v2813_v0  ;;  %v27_v1 = vld [vmem:[%s3527_s1] sm:$0xff]  ;;  %2057 = vmatprep.mubr.msk.f32.mxu0 %vm2814_vm1, %v2813_v0  ;;  %v487_v6 = vld [vmem:[%s3529_s3 + $0x8] sm:$0xff]  ;;  %v488_v8 = vld [vmem:[%s3529_s3 + $0x10] sm:$0xff]  ;;  %vm1815_vm2 = vcmask 31744  }
   0x2   :  { %v26_v2 = vld [vmem:[%s3528_s0] sm:$0xff]  ;;  %v40_v4 = vand.u32 4294901760, %v27_v1  ;;  %2040 = vmatprep.subr.mxu1 %v2813_v0  ;;  %2042 = vmatprep.mubr.msk.f32.mxu1 %vm2814_vm1, %v2813_v0  ;;  %v489_v9 = vld [vmem:[%s3529_s3 + $0x18] sm:$0xff]  ;;  %v513_v11 = vand.u32 4294901760, %v487_v6  ;;  %v491_v13 = vld [vmem:[%s3529_s3 + $0x28] sm:$0xff]  ;;  %v516_v16 = vand.u32 4294901760, %v488_v8 }
   0x3   :  { %v486_v3 = vld [vmem:[%s3529_s3] sm:$0xff]  ;;  %v37_v5 = vsel %vm35_vm0, %v26_v2, 0  ;;  %v519_v17 = vand.u32 4294901760, %v489_v9  ;;  %v525_v21 = vand.u32 4294901760, %v491_v13  ;;  %v492_v36 = vld [vmem:[%s3529_s3 + $0x30] sm:$0xff]  ;;  %v493_v37 = vld [vmem:[%s3529_s3 + $0x38] sm:$0xff] }
   0x4   :  { %v510_v7 = vand.u32 4294901760, %v486_v3  ;;  %v105_v10 = vand.u32 4294901760, %v37_v5  ;;  %v490_v12 = vld [vmem:[%s3529_s3 + $0x20] sm:$0xff]  ;;  %v117_v14 = vsub.f32 %v27_v1, %v40_v4  ;;  %2056 = vmatpush3.msra.mxu0 %v40_v4  ;;  %2041 = vmatpush3.msra.mxu1 %v40_v4  ;;  %v2890_v19 = vsub.f32 %v487_v6, %v513_v11  ;;  %v495_v42 = vld [vmem:[%s3529_s3 + $0x48] sm:$0xff]  ;;  %v496_v48 = vld [vmem:[%s3529_s3 + $0x50] sm:$0xff] }
   0x5   :  { %2045 = vmatprep.subr.mxu1 %v2813_v0  ;;  %2060 = vmatprep.subr.mxu0 %v2813_v0  ;;  %v522_v20 = vand.u32 4294901760, %v490_v12  ;;  %v2892_v23 = vsub.f32 %v488_v8, %v516_v16  ;;  %v2894_v24 = vsub.f32 %v489_v9, %v519_v17  ;;  %v2898_v27 = vsub.f32 %v491_v13, %v525_v21  ;;  %v494_v41 = vld [vmem:[%s3529_s3 + $0x40] sm:$0xff]  ;;  %v497_v49 = vld [vmem:[%s3529_s3 + $0x58] sm:$0xff]  ;;  %v499_v54 = vld [vmem:[%s3529_s3 + $0x68] sm:$0xff] }
   0x6   :  { %v2886_v15 = vsub.f32 %v486_v3, %v510_v7  ;;  %v106_v18 = vsub.f32 %v37_v5, %v105_v10  ;;  %v118_v22 = vand.u32 4294901760, %v117_v14  ;;  %v2912_v33 = vpack.c.bf16 %v513_v11, %v510_v7  ;;  %v498_v53 = vld [vmem:[%s3529_s3 + $0x60] sm:$0xff]  ;;  %v500_v58 = vld [vmem:[%s3529_s3 + $0x70] sm:$0xff]  ;;  %v501_v59 = vld [vmem:[%s3529_s3 + $0x78] sm:$0xff] }
   0x7   :  { %v2896_v26 = vsub.f32 %v490_v12, %v522_v20  ;;  %v2917_v34 = vpack.c.bf16 %v519_v17, %v516_v16  ;;  %v2923_v35 = vpack.c.bf16 %v525_v21, %v522_v20  ;;  %v528_v38 = vand.u32 4294901760, %v492_v36 }
   0x8   :  { %v107_v25 = vand.u32 4294901760, %v106_v18  ;;  %v119_v28 = vsub.f32 %v117_v14, %v118_v22  ;;  %v531_v39 = vand.u32 4294901760, %v493_v37  ;;  %v534_v45 = vand.u32 4294901760, %v494_v41 }
   0x9   :  { %v2943_v43 = vsub.f32 %v492_v36, %v528_v38  ;;  %v537_v46 = vand.u32 4294901760, %v495_v42  ;;  %v540_v50 = vand.u32 4294901760, %v496_v48  ;;  %v543_v51 = vand.u32 4294901760, %v497_v49 }
   0xa   :  { %2058 = vmatmul.mubr.f32.vlgmr.msra.gmra.mrb[0].mxu0 %v107_v25  ;;  %v108_v29 = vsub.f32 %v106_v18, %v107_v25  ;;  %v120_v30 = vand.u32 4294901760, %v119_v28  ;;  %v2934_v40 = vpack.c.bf16 %v531_v39, %v528_v38  ;;  %v2945_v44 = vsub.f32 %v493_v37, %v531_v39 }
   0xb   :  { %2061 = vmatpush3.msra.mxu0 %v118_v22  ;;  %2062 = vmatprep.mubr.msk.f32.mxu0 %vm2814_vm1, %v2813_v0  ;;  %v2948_v47 = vpack.c.bf16 %v537_v46, %v534_v45  ;;  %v2958_v52 = vpack.c.bf16 %v543_v51, %v540_v50  ;;  %v546_v55 = vand.u32 4294901760, %v498_v53  ;;  %v549_v56 = vand.u32 4294901760, %v499_v54 }
   0xc   :  { %v109_v31 = vand.u32 4294901760, %v108_v29  ;;  %2065 = vmatprep.subr.mxu0 %v2813_v0  ;;  %v552_v60 = vand.u32 4294901760, %v500_v58  ;;  %v555_v61 = vand.u32 4294901760, %v501_v59  ;;  %v603_v62 = vand.u32 4294901760, %v2886_v15 }
   0xd   :  { %v2968_v57 = vpack.c.bf16 %v549_v56, %v546_v55  ;;  %v610_v63 = vand.u32 4294901760, %v2890_v19  ;;  %v2980_v1 = vsub.f32 %v494_v41, %v534_v45  ;;  %v2982_v2 = vsub.f32 %v495_v42, %v537_v46 }
   0xe   :  { %2043 = vmatmul.mubr.f32.vlgmr.msra.gmra.mrb[0].mxu1 %v109_v31  ;;  %v2984_v3 = vsub.f32 %v496_v48, %v540_v50  ;;  %v2988_v5 = vsub.f32 %v498_v53, %v546_v55  ;;  %v2990_v6 = vsub.f32 %v499_v54, %v549_v56  ;;  %v2992_v7 = vpack.c.bf16 %v555_v61, %v552_v60 }
   0xf   :  { %2046 = vmatpush3.msra.mxu1 %v120_v30  ;;  %2047 = vmatprep.mubr.msk.f32.mxu1 %vm2814_vm1, %v2813_v0  ;;  %v2994_v8 = vsub.f32 %v500_v58, %v552_v60  ;;  %v2996_v9 = vsub.f32 %v501_v59, %v555_v61  ;;  %v611_v11 = vsub.f32 %v2890_v19, %v610_v63  ;;  %v617_v12 = vand.u32 4294901760, %v2892_v23 }
  0x10   :  { %2050 = vmatprep.subr.mxu1 %v2813_v0  ;;  %v624_v13 = vand.u32 4294901760, %v2894_v24  ;;  %v3546_v25 = vand.u32 4294901760, %v2896_v26  ;;  %v3545_v28 = vand.u32 4294901760, %v2898_v27  ;;  %v3544_v38 = vand.u32 4294901760, %v2943_v43 }
  0x11   :  { %v612_v16 = vand.u32 4294901760, %v611_v11  ;;  %v618_v17 = vsub.f32 %v2892_v23, %v617_v12  ;;  %v3543_v39 = vand.u32 4294901760, %v2945_v44  ;;  %v3541_v50 = vand.u32 4294901760, %v2982_v2 }
  0x12   :  { %2063 = vmatmul.mubr.f32.vlgmr.msra.gmra.mrb[0].mxu0 %v105_v10  ;;  %v632_v30 = vsub.f32 %v2896_v26, %v3546_v25  ;;  %v639_v31 = vsub.f32 %v2898_v27, %v3545_v28  ;;  %v646_v42 = vsub.f32 %v2943_v43, %v3544_v38  ;;  %v3540_v58 = vand.u32 4294901760, %v2984_v3 }
  0x13   :  { %2066 = vmatpush3.msra.mxu0 %v40_v4  ;;  %2067 = vmatprep.mubr.msk.f32.mxu0 %vm2814_vm1, %v2813_v0  ;;  %v2986_v4 = vsub.f32 %v497_v49, %v543_v51  ;;  %v619_v21 = vand.u32 4294901760, %v618_v17  ;;  %v653_v45 = vsub.f32 %v2945_v44, %v3543_v39  ;;  %v3542_v49 = vand.u32 4294901760, %v2980_v1 }
  0x14   :  { %2634 = vmatprep.subr.bf16.mxu0 %v2815_v32  ;;  %v633_v36 = vand.u32 4294901760, %v632_v30  ;;  %v640_v37 = vand.u32 4294901760, %v639_v31  ;;  %v647_v46 = vand.u32 4294901760, %v646_v42  ;;  %v667_v54 = vsub.f32 %v2982_v2, %v3541_v50 }
  0x15   :  { %v654_v48 = vand.u32 4294901760, %v653_v45  ;;  %v660_v53 = vsub.f32 %v2980_v1, %v3542_v49  ;;  %v3539_v59 = vand.u32 4294901760, %v2986_v4  ;;  %v674_v61 = vsub.f32 %v2984_v3, %v3540_v58  ;;  %v1160_v49 = vld [vmem:[%s3531_s5 + $0x48] sm:$0xff] }
  0x16   :  { %2048 = vmatmul.mubr.f32.vlgmr.msra.gmra.mrb[0].mxu1 %v105_v10  ;;  %v2521_v41 = vpack.c.bf16 %v640_v37, %v633_v36  ;;  %v668_v56 = vand.u32 4294901760, %v667_v54  ;;  %v3537_v17 = vand.u32 4294901760, %v2990_v6  ;;  %v3536_v36 = vand.u32 4294901760, %v2994_v8 }
  0x17   :  { %2051 = vmatpush3.msra.mxu1 %v117_v14  ;;  %2052 = vmatprep.mubr.msk.f32.mxu1 %vm2814_vm1, %v2813_v0  ;;  %v2524_v51 = vpack.c.bf16 %v654_v48, %v647_v46  ;;  %v661_v55 = vand.u32 4294901760, %v660_v53  ;;  %v675_v11 = vand.u32 4294901760, %v674_v61  ;;  %v3535_v37 = vand.u32 4294901760, %v2996_v9 }
  0x18   :  { %2490 = vmatprep.subr.bf16.mxu1 %v2815_v32  ;;  %v702_v45 = vsub.f32 %v2994_v8, %v3536_v36  ;;  %v2545_v61 = vpack.c.bf16 %v2898_v27, %v2896_v26 }
  0x19   :  { %v2527_v60 = vpack.c.bf16 %v668_v56, %v661_v55  ;;  %v709_v46 = vsub.f32 %v2996_v9, %v3535_v37  ;;  %v2539_v55 = vpack.c.bf16 %v2890_v19, %v2886_v15  ;;  %v2542_v56 = vpack.c.bf16 %v2894_v24, %v2892_v23 }
  0x1a   :  { %2068 = vmatmul.mubr.f32.vlgmr.msra.gmra.mrb[0].mxu0 %v105_v10  ;;  %v604_v10 = vsub.f32 %v2886_v15, %v603_v62  ;;  %v703_v48 = vand.u32 4294901760, %v702_v45  ;;  %v1821_v45 = vld [vmem:[%s3530_s2] ss:$0 sm:$0xff]  ;;  %v3551_v15 = vand.u32 4294901760, %v2896_v26  ;;  %v3552_v19 = vand.u32 4294901760, %v2898_v27 }
  0x1b   :  { %2312 = vmatprep.mubr.msk.f32.mxu0 %vm2814_vm1, %v2813_v0  ;;  %v710_v53 = vand.u32 4294901760, %v709_v46  ;;  %v3554_v23 = vand.u32 4294901760, %v2945_v44  ;;  %v3557_v26 = vand.u32 4294901760, %v2984_v3  ;;  %v3558_v27 = vand.u32 4294901760, %v2986_v4 }
  0x1c   :  { %v605_v14 = vand.u32 4294901760, %v604_v10  ;;  %v681_v10 = vsub.f32 %v2986_v4, %v3539_v59 }
  0x1d   :  { %v2536_v54 = vpack.c.bf16 %v710_v53, %v703_v48 }
  0x1e   :  { %2053 = vmatmul.mubr.f32.vlgmr.msra.gmra.mrb[0].mxu1 %v106_v18  ;;  %v625_v18 = vsub.f32 %v2894_v24, %v624_v13  ;;  %v3014_v20 = vpack.c.bf16 %v612_v16, %v605_v14  ;;  %v682_v14 = vand.u32 4294901760, %v681_v10  ;;  %v3538_v16 = vand.u32 4294901760, %v2988_v5 }
  0x1f   :  { %2492 = vmatpush3.bf16.msra.mxu1 %v2912_v33  ;;  %2102 = vmatprep.mubr.msk.f32.mxu1 %vm2814_vm1, %v2813_v0  ;;  %v2548_v10 = vpack.c.bf16 %v2945_v44, %v2943_v43  ;;  %v3560_v44 = vand.u32 4294901760, %v2990_v6 }
  0x20   :  { %2493 = vmatprep.subr.bf16.mxu1 %v2815_v32  ;;  %v626_v22 = vand.u32 4294901760, %v625_v18  ;;  %v2530_v18 = vpack.c.bf16 %v682_v14, %v675_v11  ;;  %v2551_v11 = vpack.c.bf16 %v2982_v2, %v2980_v1  ;;  %v2554_v14 = vpack.c.bf16 %v2986_v4, %v2984_v3 }
  0x22   :  { %v3018_v29 = vpack.c.bf16 %v626_v22, %v619_v21  ;;  %v688_v21 = vsub.f32 %v2988_v5, %v3538_v16  ;;  %v695_v22 = vsub.f32 %v2990_v6, %v3537_v17 }
  0x23   :  { %2495 = vmatpush3.bf16.msra.mxu1 %v2917_v34 }
  0x24   :  { %2496 = vmatprep.subr.bf16.mxu1 %v2815_v32  ;;  %v689_v30 = vand.u32 4294901760, %v688_v21  ;;  %v696_v31 = vand.u32 4294901760, %v695_v22  ;;  %v2557_v21 = vpack.c.bf16 %v2990_v6, %v2988_v5  ;;  %v2560_v22 = vpack.c.bf16 %v2996_v9, %v2994_v8  ;;  %v1165_v6 = vld [vmem:[%s3531_s5 + $0x70] sm:$0xff] }
  0x26   :  { %v2533_v42 = vpack.c.bf16 %v696_v31, %v689_v30 }
  0x27   :  { %2498 = vmatpush3.bf16.msra.mxu1 %v2923_v35 }
  0x28   :  { %2499 = vmatprep.subr.bf16.mxu1 %v2815_v32 }
  0x2b   :  { %2501 = vmatpush3.bf16.msra.mxu1 %v2934_v40 }
  0x2c   :  { %2502 = vmatprep.subr.bf16.mxu1 %v2815_v32 }
  0x2f   :  { %2504 = vmatpush3.bf16.msra.mxu1 %v2948_v47 }
  0x30   :  { %2505 = vmatprep.subr.bf16.mxu1 %v2815_v32 }
  0x33   :  { %2507 = vmatpush3.bf16.msra.mxu1 %v2958_v52 }
  0x34   :  { %2508 = vmatprep.subr.bf16.mxu1 %v2815_v32 }
  0x37   :  { %2510 = vmatpush3.bf16.msra.mxu1 %v2968_v57 }
  0x38   :  { %2511 = vmatprep.subr.bf16.mxu1 %v2815_v32 }
  0x3b   :  { %2513 = vmatpush3.bf16.msra.mxu1 %v2992_v7 }
  0x3c   :  { %2514 = vmatprep.subr.bf16.mxu1 %v2815_v32 }
  0xed   :  { %v481_v30 = vpop.f32.mrb[0].mxu0 }
  0xee   :  { %v2069_v31 = vpop.f32.mrb[1].mxu0 }
  0xf1   :  { %v261_v46 = vpop.f32.mrb[0].mxu1 }
  0xf2   :  { %v2778_v48 = vadd.f32 %v1821_v45, %v261_v46  ;;  %v2054_v53 = vpop.f32.mrb[1].mxu1  ;;  %v1158_v45 = vld [vmem:[%s3531_s5 + $0x38] sm:$0xff]  ;;  %v1159_v46 = vld [vmem:[%s3531_s5 + $0x40] sm:$0xff] }
  0xf4   :  { %v2779_v37 = vadd.f32 %v2778_v48, %v481_v30  ;;  %v1157_v30 = vld [vmem:[%s3531_s5 + $0x30] sm:$0xff] }
  0xf6   :  { %v485_v36 = vmax.f32 %v2779_v37, 0.0  ;;  %v1156_v37 = vld [vmem:[%s3531_s5 + $0x28] sm:$0xff] }
  0xf8   :  { %v3085_v17 = vand.u32 4294901760, %v485_v36 }
  0xfa   :  { %v3088_v16 = vsub.f32 %v485_v36, %v3085_v17  ;;  %v1155_v36 = vld [vmem:[%s3531_s5 + $0x20] sm:$0xff] }
  0xfc   :  { %v592_v59 = vand.u32 4294901760, %v3088_v16 }
  0xfe   :  { %v593_v31 = vsub.f32 %v3088_v16, %v592_v59 }
 0x100   :  { %v594_v58 = vand.u32 4294901760, %v593_v31 }
 0x102   :  { %2103 = vmatmul.mubr.f32.vlgmr.msra.gmra.mrb[2].mxu1 %v594_v58 }
 0x103   :  { %2516 = vmatpush3.bf16.msra.mxu1 %v3014_v20  ;;  %2137 = vmatprep.mubr.msk.f32.mxu1 %vm2814_vm1, %v2813_v0  ;;  %v1151_v20 = vld [vmem:[%s3531_s5] sm:$0xff] }
 0x104   :  { %2517 = vmatprep.subr.bf16.mxu1 %v2815_v32 }
 0x107   :  { %2519 = vmatpush3.bf16.msra.mxu1 %v3018_v29  ;;  %v1152_v29 = vld [vmem:[%s3531_s5 + $0x8] sm:$0xff] }
 0x108   :  { %2520 = vmatprep.subr.bf16.mxu1 %v2815_v32  ;;  %v1178_v58 = vand.u32 4294901760, %v1152_v29 }
 0x10a   :  { %v3141_v31 = vsub.f32 %v1152_v29, %v1178_v58  ;;  %v1193_v29 = vand.u32 4294901760, %v1157_v30 }
 0x10b   :  { %2522 = vmatpush3.bf16.msra.mxu1 %v2521_v41  ;;  %v1153_v41 = vld [vmem:[%s3531_s5 + $0x10] sm:$0xff] }
 0x10c   :  { %2523 = vmatprep.subr.bf16.mxu1 %v2815_v32  ;;  %v3162_v25 = vsub.f32 %v1157_v30, %v1193_v29 }
 0x10f   :  { %2525 = vmatpush3.bf16.msra.mxu1 %v2524_v51  ;;  %v1175_v51 = vand.u32 4294901760, %v1151_v20 }
 0x110   :  { %2526 = vmatprep.subr.bf16.mxu1 %v2815_v32 }
 0x111   :  { %v3137_v48 = vpack.c.bf16 %v1178_v58, %v1175_v51  ;;  %v3139_v53 = vsub.f32 %v1151_v20, %v1175_v51  ;;  %v1199_v51 = vand.u32 4294901760, %v1159_v46  ;;  %v1202_v58 = vand.u32 4294901760, %v1160_v49 }
 0x113   :  { %2528 = vmatpush3.bf16.msra.mxu1 %v2527_v60  ;;  %v1154_v60 = vld [vmem:[%s3531_s5 + $0x18] sm:$0xff]  ;;  %2636 = vmatpush3.bf16.msra.mxu0 %v3137_v48 }
 0x114   :  { %2529 = vmatprep.subr.bf16.mxu1 %v2815_v32  ;;  %2637 = vmatprep.subr.bf16.mxu0 %v2815_v32 }
 0x117   :  { %2531 = vmatpush3.bf16.msra.mxu1 %v2530_v18  ;;  %v1181_v18 = vand.u32 4294901760, %v1153_v41 }
 0x118   :  { %2532 = vmatprep.subr.bf16.mxu1 %v2815_v32 }
 0x119   :  { %v3143_v50 = vsub.f32 %v1153_v41, %v1181_v18  ;;  %v1196_v41 = vand.u32 4294901760, %v1158_v45 }
 0x11b   :  { %2534 = vmatpush3.bf16.msra.mxu1 %v2533_v42  ;;  %v1184_v42 = vand.u32 4294901760, %v1154_v60 }
 0x11c   :  { %2535 = vmatprep.subr.bf16.mxu1 %v2815_v32 }
 0x11d   :  { %v3151_v39 = vpack.c.bf16 %v1184_v42, %v1181_v18  ;;  %v3153_v38 = vsub.f32 %v1154_v60, %v1184_v42  ;;  %v3166_v60 = vsub.f32 %v1159_v46, %v1199_v51  ;;  %v3171_v18 = vsub.f32 %v1160_v49, %v1202_v58 }
 0x11e   :  { %v3191_v49 = vpack.c.bf16 %v1202_v58, %v1199_v51 }
 0x11f   :  { %2537 = vmatpush3.bf16.msra.mxu1 %v2536_v54  ;;  %v1187_v54 = vand.u32 4294901760, %v1155_v36  ;;  %2639 = vmatpush3.bf16.msra.mxu0 %v3151_v39 }
 0x120   :  { %2538 = vmatprep.subr.bf16.mxu1 %v2815_v32  ;;  %2640 = vmatprep.subr.bf16.mxu0 %v2815_v32 }
 0x121   :  { %v3155_v28 = vsub.f32 %v1155_v36, %v1187_v54 }
 0x122   :  { %2138 = vmatmul.mubr.f32.vlgmr.msra.gmra.mrb[2].mxu1 %v3085_v17 }
 0x123   :  { %2540 = vmatpush3.bf16.msra.mxu1 %v2539_v55  ;;  %2172 = vmatprep.mubr.msk.f32.mxu1 %vm2814_vm1, %v2813_v0  ;;  %v1190_v55 = vand.u32 4294901760, %v1156_v37 }
 0x124   :  { %2541 = vmatprep.subr.bf16.mxu1 %v2815_v32 }
 0x125   :  { %v3159_v20 = vsub.f32 %v1156_v37, %v1190_v55  ;;  %v3175_v36 = vpack.c.bf16 %v1190_v55, %v1187_v54  ;;  %v3183_v37 = vpack.c.bf16 %v1196_v41, %v1193_v29 }
 0x127   :  { %2543 = vmatpush3.bf16.msra.mxu1 %v2542_v56  ;;  %v3164_v56 = vsub.f32 %v1158_v45, %v1196_v41  ;;  %2642 = vmatpush3.bf16.msra.mxu0 %v3175_v36 }
 0x128   :  { %2544 = vmatprep.subr.bf16.mxu1 %v2815_v32  ;;  %2643 = vmatprep.subr.bf16.mxu0 %v2815_v32 }
 0x12b   :  { %2546 = vmatpush3.bf16.msra.mxu1 %v2545_v61  ;;  %2645 = vmatpush3.bf16.msra.mxu0 %v3183_v37  ;;  %v2587_v61 = vpack.c.bf16 %v610_v63, %v603_v62  ;;  %v2593_v62 = vpack.c.bf16 %v3552_v19, %v3551_v15  ;;  %v3553_v63 = vand.u32 4294901760, %v2943_v43  ;;  %v3559_v43 = vand.u32 4294901760, %v2988_v5 }
 0x12c   :  { %2547 = vmatprep.subr.bf16.mxu1 %v2815_v32  ;;  %2646 = vmatprep.subr.bf16.mxu0 %v2815_v32 }
 0x12d   :  { %v2596_v24 = vpack.c.bf16 %v3554_v23, %v3553_v63  ;;  %v1296_v63 = vand.u32 4294901760, %v3155_v28  ;;  %v1303_v23 = vand.u32 4294901760, %v3159_v20 }
 0x12f   :  { %2549 = vmatpush3.bf16.msra.mxu1 %v2548_v10  ;;  %2648 = vmatpush3.bf16.msra.mxu0 %v3191_v49  ;;  %v2590_v10 = vpack.c.bf16 %v624_v13, %v617_v12  ;;  %v3555_v12 = vand.u32 4294901760, %v2980_v1  ;;  %v3556_v13 = vand.u32 4294901760, %v2982_v2  ;;  %v3561_v1 = vand.u32 4294901760, %v2994_v8 }
 0x130   :  { %2550 = vmatprep.subr.bf16.mxu1 %v2815_v32  ;;  %2649 = vmatprep.subr.bf16.mxu0 %v2815_v32  ;;  %v3562_v2 = vand.u32 4294901760, %v2996_v9  ;;  %v1217_v8 = vand.u32 4294901760, %v1165_v6 }
 0x132   :  { %v3335_v29 = vsub.f32 %v1165_v6, %v1217_v8 }
 0x133   :  { %2552 = vmatpush3.bf16.msra.mxu1 %v2551_v11  ;;  %v2605_v11 = vpack.c.bf16 %v3560_v44, %v3559_v43  ;;  %v1310_v43 = vand.u32 4294901760, %v3162_v25  ;;  %v1317_v44 = vand.u32 4294901760, %v3164_v56 }
 0x134   :  { %2553 = vmatprep.subr.bf16.mxu1 %v2815_v32 }
 0x137   :  { %2555 = vmatpush3.bf16.msra.mxu1 %v2554_v14  ;;  %v2608_v14 = vpack.c.bf16 %v3562_v2, %v3561_v1  ;;  %v1311_v1 = vsub.f32 %v3162_v25, %v1310_v43  ;;  %v1318_v2 = vsub.f32 %v3164_v56, %v1317_v44 }
 0x138   :  { %2556 = vmatprep.subr.bf16.mxu1 %v2815_v32 }
 0x13b   :  { %2558 = vmatpush3.bf16.msra.mxu1 %v2557_v21  ;;  %v1275_v21 = vand.u32 4294901760, %v3141_v31 }
 0x13c   :  { %2559 = vmatprep.subr.bf16.mxu1 %v2815_v32 }
 0x13d   :  { %v1276_v54 = vsub.f32 %v3141_v31, %v1275_v21 }
 0x13f   :  { %2561 = vmatpush3.bf16.msra.mxu1 %v2560_v22  ;;  %v1277_v58 = vand.u32 4294901760, %v1276_v54 }
 0x140   :  { %2562 = vmatprep.subr.bf16.mxu1 %v2815_v32 }
 0x142   :  { %2173 = vmatmul.mubr.f32.vlgmr.msra.gmra.mrb[2].mxu1 %v3088_v16  ;;  %v2602_v16 = vpack.c.bf16 %v3558_v27, %v3557_v26 }
 0x143   :  { %2564 = vmatpush3.bf16.msra.mxu1 %v2912_v33  ;;  %2207 = vmatprep.mubr.msk.f32.mxu1 %vm2814_vm1, %v2813_v0 }
 0x144   :  { %2565 = vmatprep.subr.bf16.mxu1 %v2815_v32 }
 0x147   :  { %2567 = vmatpush3.bf16.msra.mxu1 %v2917_v34 }
 0x148   :  { %2568 = vmatprep.subr.bf16.mxu1 %v2815_v32 }
 0x14b   :  { %2570 = vmatpush3.bf16.msra.mxu1 %v2923_v35 }
 0x14c   :  { %2571 = vmatprep.subr.bf16.mxu1 %v2815_v32 }
 0x14f   :  { %2573 = vmatpush3.bf16.msra.mxu1 %v2934_v40 }
 0x150   :  { %2574 = vmatprep.subr.bf16.mxu1 %v2815_v32 }
 0x153   :  { %2576 = vmatpush3.bf16.msra.mxu1 %v2948_v47 }
 0x154   :  { %2577 = vmatprep.subr.bf16.mxu1 %v2815_v32 }
 0x157   :  { %2579 = vmatpush3.bf16.msra.mxu1 %v2958_v52 }
 0x158   :  { %2580 = vmatprep.subr.bf16.mxu1 %v2815_v32 }
 0x15b   :  { %2582 = vmatpush3.bf16.msra.mxu1 %v2968_v57 }
 0x15c   :  { %2583 = vmatprep.subr.bf16.mxu1 %v2815_v32 }
 0x15f   :  { %2585 = vmatpush3.bf16.msra.mxu1 %v2992_v7 }
 0x160   :  { %2586 = vmatprep.subr.bf16.mxu1 %v2815_v32 }
 0x162   :  { %2208 = vmatmul.mubr.f32.vlgmr.msra.gmra.mrb[2].mxu1 %v592_v59  ;;  %v2599_v59 = vpack.c.bf16 %v3556_v13, %v3555_v12  ;;  %v1297_v13 = vsub.f32 %v3155_v28, %v1296_v63 }
 0x163   :  { %2588 = vmatpush3.bf16.msra.mxu1 %v2587_v61  ;;  %2242 = vmatprep.mubr.msk.f32.mxu1 %vm2814_vm1, %v2813_v0  ;;  %v1282_v61 = vand.u32 4294901760, %v3143_v50 }
 0x164   :  { %2589 = vmatprep.subr.bf16.mxu1 %v2815_v32  ;;  %v1298_v27 = vand.u32 4294901760, %v1297_v13 }
 0x165   :  { %v1283_v19 = vsub.f32 %v3143_v50, %v1282_v61 }
 0x167   :  { %2591 = vmatpush3.bf16.msra.mxu1 %v2590_v10  ;;  %v1289_v10 = vand.u32 4294901760, %v3153_v38 }
 0x168   :  { %2592 = vmatprep.subr.bf16.mxu1 %v2815_v32 }
 0x16b   :  { %2594 = vmatpush3.bf16.msra.mxu1 %v2593_v62  ;;  %v1290_v62 = vsub.f32 %v3153_v38, %v1289_v10 }
 0x16c   :  { %2595 = vmatprep.subr.bf16.mxu1 %v2815_v32 }
 0x16d   :  { %v1291_v12 = vand.u32 4294901760, %v1290_v62 }
 0x16f   :  { %2597 = vmatpush3.bf16.msra.mxu1 %v2596_v24  ;;  %v1284_v24 = vand.u32 4294901760, %v1283_v19 }
 0x170   :  { %2598 = vmatprep.subr.bf16.mxu1 %v2815_v32 }
 0x171   :  { %v2662_v26 = vpack.c.bf16 %v1291_v12, %v1284_v24 }
 0x173   :  { %2600 = vmatpush3.bf16.msra.mxu1 %v2599_v59  ;;  %v1304_v59 = vsub.f32 %v3159_v20, %v1303_v23 }
 0x174   :  { %2601 = vmatprep.subr.bf16.mxu1 %v2815_v32 }
 0x177   :  { %2603 = vmatpush3.bf16.msra.mxu1 %v2602_v16  ;;  %v1305_v16 = vand.u32 4294901760, %v1304_v59 }
 0x178   :  { %2604 = vmatprep.subr.bf16.mxu1 %v2815_v32 }
 0x17b   :  { %2606 = vmatpush3.bf16.msra.mxu1 %v2605_v11  ;;  %v2665_v11 = vpack.c.bf16 %v1305_v16, %v1298_v27  ;;  %v3548_v27 = vand.u32 4294901760, %v3335_v29 }
 0x17c   :  { %2607 = vmatprep.subr.bf16.mxu1 %v2815_v32 }
 0x17f   :  { %2609 = vmatpush3.bf16.msra.mxu1 %v2608_v14  ;;  %v1312_v14 = vand.u32 4294901760, %v1311_v1 }
 0x180   :  { %2610 = vmatprep.subr.bf16.mxu1 %v2815_v32 }
 0x182   :  { %2243 = vmatmul.mubr.f32.vlgmr.msra.gmra.mrb[2].mxu1 %v3085_v17 }
 0x183   :  { %2612 = vmatpush3.bf16.msra.mxu1 %v2912_v33  ;;  %2277 = vmatprep.mubr.msk.f32.mxu1 %vm2814_vm1, %v2813_v0  ;;  %v1161_v33 = vld [vmem:[%s3531_s5 + $0x50] sm:$0xff] }
 0x184   :  { %2613 = vmatprep.subr.bf16.mxu1 %v2815_v32 }
 0x187   :  { %2615 = vmatpush3.bf16.msra.mxu1 %v2917_v34  ;;  %v1162_v34 = vld [vmem:[%s3531_s5 + $0x58] sm:$0xff] }
 0x188   :  { %2616 = vmatprep.subr.bf16.mxu1 %v2815_v32 }
 0x18b   :  { %2618 = vmatpush3.bf16.msra.mxu1 %v2923_v35  ;;  %v1205_v35 = vand.u32 4294901760, %v1161_v33 }
 0x18c   :  { %2619 = vmatprep.subr.bf16.mxu1 %v2815_v32 }
 0x18d   :  { %v3326_v55 = vsub.f32 %v1161_v33, %v1205_v35  ;;  %v1319_v33 = vand.u32 4294901760, %v1318_v2  ;;  %v1367_v2 = vsub.f32 %v3335_v29, %v3548_v27 }
 0x18f   :  { %2621 = vmatpush3.bf16.msra.mxu1 %v2934_v40  ;;  %v1208_v40 = vand.u32 4294901760, %v1162_v34  ;;  %v1338_v6 = vand.u32 4294901760, %v3326_v55 }
 0x190   :  { %2622 = vmatprep.subr.bf16.mxu1 %v2815_v32 }
 0x191   :  { %v3328_v30 = vsub.f32 %v1162_v34, %v1208_v40  ;;  %v1324_v34 = vand.u32 4294901760, %v3166_v60 }
 0x193   :  { %2624 = vmatpush3.bf16.msra.mxu1 %v2948_v47  ;;  %v3296_v47 = vpack.c.bf16 %v1208_v40, %v1205_v35  ;;  %v1331_v35 = vand.u32 4294901760, %v3171_v18  ;;  %v2668_v40 = vpack.c.bf16 %v1319_v33, %v1312_v14  ;;  %v1368_v33 = vand.u32 4294901760, %v1367_v2 }
 0x194   :  { %2625 = vmatprep.subr.bf16.mxu1 %v2815_v32 }
 0x195   :  { %2651 = vmatpush3.bf16.msra.mxu0 %v3296_v47 }
 0x196   :  { %2652 = vmatprep.subr.bf16.mxu0 %v2815_v32 }
 0x197   :  { %2627 = vmatpush3.bf16.msra.mxu1 %v2958_v52  ;;  %v1163_v52 = vld [vmem:[%s3531_s5 + $0x60] sm:$0xff] }
 0x198   :  { %2628 = vmatprep.subr.bf16.mxu1 %v2815_v32  ;;  %v1211_v3 = vand.u32 4294901760, %v1163_v52 }
 0x19a   :  { %v3330_v45 = vsub.f32 %v1163_v52, %v1211_v3  ;;  %v1325_v52 = vsub.f32 %v3166_v60, %v1324_v34 }
 0x19b   :  { %2630 = vmatpush3.bf16.msra.mxu1 %v2968_v57  ;;  %v1164_v57 = vld [vmem:[%s3531_s5 + $0x68] sm:$0xff] }
 0x19c   :  { %2631 = vmatprep.subr.bf16.mxu1 %v2815_v32  ;;  %v1214_v4 = vand.u32 4294901760, %v1164_v57 }
 0x19e   :  { %v3306_v5 = vpack.c.bf16 %v1214_v4, %v1211_v3  ;;  %v3332_v46 = vsub.f32 %v1164_v57, %v1214_v4  ;;  %v1332_v57 = vsub.f32 %v3171_v18, %v1331_v35  ;;  %v1326_v3 = vand.u32 4294901760, %v1325_v52 }
 0x19f   :  { %2633 = vmatpush3.bf16.msra.mxu1 %v2992_v7  ;;  %v1166_v7 = vld [vmem:[%s3531_s5 + $0x78] sm:$0xff] }
 0x1a0   :  { %2654 = vmatpush3.bf16.msra.mxu0 %v3306_v5  ;;  %v1220_v9 = vand.u32 4294901760, %v1166_v7  ;;  %v1333_v4 = vand.u32 4294901760, %v1332_v57  ;;  %v3549_v19 = vand.u32 4294901760, %v3332_v46 }
 0x1a1   :  { %2655 = vmatprep.subr.bf16.mxu0 %v2815_v32 }
 0x1a2   :  { %2278 = vmatmul.mubr.f32.vlgmr.msra.gmra.mrb[2].mxu1 %v3085_v17  ;;  %v1268_v17 = vand.u32 4294901760, %v3139_v53  ;;  %v3318_v22 = vpack.c.bf16 %v1220_v9, %v1217_v8  ;;  %v3337_v41 = vsub.f32 %v1166_v7, %v1220_v9  ;;  %v1345_v7 = vand.u32 4294901760, %v3328_v30 }
 0x1a3   :  { %v2671_v8 = vpack.c.bf16 %v1333_v4, %v1326_v3  ;;  %v1339_v9 = vsub.f32 %v3326_v55, %v1338_v6  ;;  %v1360_v12 = vsub.f32 %v3332_v46, %v3549_v19  ;;  %v2683_v3 = vpack.c.bf16 %v3141_v31, %v3139_v53 }
 0x1a4   :  { %v1269_v42 = vsub.f32 %v3139_v53, %v1268_v17  ;;  %2657 = vmatpush3.bf16.msra.mxu0 %v3318_v22  ;;  %v3547_v16 = vand.u32 4294901760, %v3337_v41  ;;  %v2686_v4 = vpack.c.bf16 %v3153_v38, %v3143_v50  ;;  %v2737_v53 = vpack.c.bf16 %v1303_v23, %v1296_v63 }
 0x1a5   :  { %2658 = vmatprep.subr.bf16.mxu0 %v2815_v32  ;;  %v1340_v54 = vand.u32 4294901760, %v1339_v9  ;;  %v1361_v59 = vand.u32 4294901760, %v1360_v12  ;;  %v2689_v9 = vpack.c.bf16 %v3159_v20, %v3155_v28  ;;  %v2704_v12 = vpack.c.bf16 %v3337_v41, %v3335_v29 }
 0x1a6   :  { %v1270_v51 = vand.u32 4294901760, %v1269_v42  ;;  %v1346_v42 = vsub.f32 %v3328_v30, %v1345_v7  ;;  %v1374_v14 = vsub.f32 %v3337_v41, %v3547_v16  ;;  %v2740_v38 = vpack.c.bf16 %v1317_v44, %v1310_v43 }
 0x1a7   :  { %v2743_v50 = vpack.c.bf16 %v1331_v35, %v1324_v34  ;;  %v2746_v28 = vpack.c.bf16 %v1345_v7, %v1338_v6  ;;  %v3564_v31 = vand.u32 4294901760, %v3332_v46 }
 0x1a8   :  { %v3342_v15 = vpack.c.bf16 %v1277_v58, %v1270_v51  ;;  %v1347_v51 = vand.u32 4294901760, %v1346_v42  ;;  %v3550_v58 = vand.u32 4294901760, %v3330_v45  ;;  %v1375_v52 = vand.u32 4294901760, %v1374_v14 }
 0x1a9   :  { %v2692_v42 = vpack.c.bf16 %v3164_v56, %v3162_v25  ;;  %v3563_v25 = vand.u32 4294901760, %v3330_v45  ;;  %v3565_v56 = vand.u32 4294901760, %v3335_v29 }
 0x1aa   :  { %v2674_v62 = vpack.c.bf16 %v1347_v51, %v1340_v54  ;;  %v1353_v24 = vsub.f32 %v3330_v45, %v3550_v58  ;;  %v2680_v57 = vpack.c.bf16 %v1375_v52, %v1368_v33  ;;  %v2695_v54 = vpack.c.bf16 %v3171_v18, %v3166_v60 }
 0x1ab   :  { %v2698_v51 = vpack.c.bf16 %v3328_v30, %v3326_v55  ;;  %v2749_v20 = vpack.c.bf16 %v3564_v31, %v3563_v25  ;;  %v3566_v60 = vand.u32 4294901760, %v3337_v41 }
 0x1ac   :  { %v1354_v13 = vand.u32 4294901760, %v1353_v24  ;;  %v2701_v24 = vpack.c.bf16 %v3332_v46, %v3330_v45 }
 0x1ad   :  { %v2752_v18 = vpack.c.bf16 %v3566_v60, %v3565_v56 }
 0x1ae   :  { %v2677_v1 = vpack.c.bf16 %v1361_v59, %v1354_v13  ;;  %v1822_v13 = vld [vmem:[%s3532_s4] ss:$0 sm:$0xff] }
 0x275   :  { %v1146_v59 = vpop.f32.mrb[2].mxu1 }
 0x276   :  { %v2780_v2 = vadd.f32 %v1822_v13, %v1146_v59  ;;  %v2279_v14 = vpop.f32.mrb[3].mxu1 }
 0x278   :  { %v1150_v33 = vmax.f32 %v2780_v2, 0.0 }
 0x27a   :  { %v3417_v52 = vand.u32 4294901760, %v1150_v33 }
 0x27c   :  { %v1256_v16 = vsub.f32 %v1150_v33, %v3417_v52 }
 0x27e   :  { %v1257_v27 = vand.u32 4294901760, %v1256_v16 }
 0x280   :  { %v1258_v19 = vsub.f32 %v1256_v16, %v1257_v27 }
 0x282   :  { %v1259_v58 = vand.u32 4294901760, %v1258_v19 }
 0x284   :  { %2313 = vmatmul.mubr.f32.vlgmr.msra.gmra.mrb[2].mxu0 %v1259_v58 }
 0x285   :  { %2660 = vmatpush3.bf16.msra.mxu0 %v3342_v15  ;;  %2347 = vmatprep.mubr.msk.f32.mxu0 %vm2814_vm1, %v2813_v0  ;;  %v2731_v15 = vpack.c.bf16 %v1275_v21, %v1268_v17 }
 0x286   :  { %2661 = vmatprep.subr.bf16.mxu0 %v2815_v32 }
 0x289   :  { %2663 = vmatpush3.bf16.msra.mxu0 %v2662_v26  ;;  %v2734_v26 = vpack.c.bf16 %v1289_v10, %v1282_v61 }
 0x28a   :  { %2664 = vmatprep.subr.bf16.mxu0 %v2815_v32 }
 0x28d   :  { %2666 = vmatpush3.bf16.msra.mxu0 %v2665_v11 }
 0x28e   :  { %2667 = vmatprep.subr.bf16.mxu0 %v2815_v32 }
 0x291   :  { %2669 = vmatpush3.bf16.msra.mxu0 %v2668_v40 }
 0x292   :  { %2670 = vmatprep.subr.bf16.mxu0 %v2815_v32 }
 0x295   :  { %2672 = vmatpush3.bf16.msra.mxu0 %v2671_v8 }
 0x296   :  { %2673 = vmatprep.subr.bf16.mxu0 %v2815_v32 }
 0x299   :  { %2675 = vmatpush3.bf16.msra.mxu0 %v2674_v62 }
 0x29a   :  { %2676 = vmatprep.subr.bf16.mxu0 %v2815_v32 }
 0x29d   :  { %2678 = vmatpush3.bf16.msra.mxu0 %v2677_v1 }
 0x29e   :  { %2679 = vmatprep.subr.bf16.mxu0 %v2815_v32 }
 0x2a1   :  { %2681 = vmatpush3.bf16.msra.mxu0 %v2680_v57 }
 0x2a2   :  { %2682 = vmatprep.subr.bf16.mxu0 %v2815_v32 }
 0x2a4   :  { %2348 = vmatmul.mubr.f32.vlgmr.msra.gmra.mrb[2].mxu0 %v3417_v52 }
 0x2a5   :  { %2684 = vmatpush3.bf16.msra.mxu0 %v2683_v3  ;;  %2382 = vmatprep.mubr.msk.f32.mxu0 %vm2814_vm1, %v2813_v0 }
 0x2a6   :  { %2685 = vmatprep.subr.bf16.mxu0 %v2815_v32 }
 0x2a9   :  { %2687 = vmatpush3.bf16.msra.mxu0 %v2686_v4 }
 0x2aa   :  { %2688 = vmatprep.subr.bf16.mxu0 %v2815_v32 }
 0x2ad   :  { %2690 = vmatpush3.bf16.msra.mxu0 %v2689_v9 }
 0x2ae   :  { %2691 = vmatprep.subr.bf16.mxu0 %v2815_v32 }
 0x2b1   :  { %2693 = vmatpush3.bf16.msra.mxu0 %v2692_v42 }
 0x2b2   :  { %2694 = vmatprep.subr.bf16.mxu0 %v2815_v32 }
 0x2b5   :  { %2696 = vmatpush3.bf16.msra.mxu0 %v2695_v54 }
 0x2b6   :  { %2697 = vmatprep.subr.bf16.mxu0 %v2815_v32 }
 0x2b9   :  { %2699 = vmatpush3.bf16.msra.mxu0 %v2698_v51 }
 0x2ba   :  { %2700 = vmatprep.subr.bf16.mxu0 %v2815_v32 }
 0x2bd   :  { %2702 = vmatpush3.bf16.msra.mxu0 %v2701_v24 }
 0x2be   :  { %2703 = vmatprep.subr.bf16.mxu0 %v2815_v32 }
 0x2c1   :  { %2705 = vmatpush3.bf16.msra.mxu0 %v2704_v12 }
 0x2c2   :  { %2706 = vmatprep.subr.bf16.mxu0 %v2815_v32 }
 0x2c4   :  { %2383 = vmatmul.mubr.f32.vlgmr.msra.gmra.mrb[2].mxu0 %v1256_v16 }
 0x2c5   :  { %2708 = vmatpush3.bf16.msra.mxu0 %v3137_v48  ;;  %2417 = vmatprep.mubr.msk.f32.mxu0 %vm2814_vm1, %v2813_v0 }
 0x2c6   :  { %2709 = vmatprep.subr.bf16.mxu0 %v2815_v32 }
 0x2c9   :  { %2711 = vmatpush3.bf16.msra.mxu0 %v3151_v39 }
 0x2ca   :  { %2712 = vmatprep.subr.bf16.mxu0 %v2815_v32 }
 0x2cd   :  { %2714 = vmatpush3.bf16.msra.mxu0 %v3175_v36 }
 0x2ce   :  { %2715 = vmatprep.subr.bf16.mxu0 %v2815_v32 }
 0x2d1   :  { %2717 = vmatpush3.bf16.msra.mxu0 %v3183_v37 }
 0x2d2   :  { %2718 = vmatprep.subr.bf16.mxu0 %v2815_v32 }
 0x2d5   :  { %2720 = vmatpush3.bf16.msra.mxu0 %v3191_v49 }
 0x2d6   :  { %2721 = vmatprep.subr.bf16.mxu0 %v2815_v32 }
 0x2d9   :  { %2723 = vmatpush3.bf16.msra.mxu0 %v3296_v47 }
 0x2da   :  { %2724 = vmatprep.subr.bf16.mxu0 %v2815_v32 }
 0x2dd   :  { %2726 = vmatpush3.bf16.msra.mxu0 %v3306_v5 }
 0x2de   :  { %2727 = vmatprep.subr.bf16.mxu0 %v2815_v32 }
 0x2e1   :  { %2729 = vmatpush3.bf16.msra.mxu0 %v3318_v22 }
 0x2e2   :  { %2730 = vmatprep.subr.bf16.mxu0 %v2815_v32 }
 0x2e4   :  { %2418 = vmatmul.mubr.f32.vlgmr.msra.gmra.mrb[2].mxu0 %v1257_v27 }
 0x2e5   :  { %2732 = vmatpush3.bf16.msra.mxu0 %v2731_v15  ;;  %2452 = vmatprep.mubr.msk.f32.mxu0 %vm2814_vm1, %v2813_v0 }
 0x2e6   :  { %2733 = vmatprep.subr.bf16.mxu0 %v2815_v32 }
 0x2e9   :  { %2735 = vmatpush3.bf16.msra.mxu0 %v2734_v26 }
 0x2ea   :  { %2736 = vmatprep.subr.bf16.mxu0 %v2815_v32 }
 0x2ed   :  { %2738 = vmatpush3.bf16.msra.mxu0 %v2737_v53 }
 0x2ee   :  { %2739 = vmatprep.subr.bf16.mxu0 %v2815_v32 }
 0x2f1   :  { %2741 = vmatpush3.bf16.msra.mxu0 %v2740_v38 }
 0x2f2   :  { %2742 = vmatprep.subr.bf16.mxu0 %v2815_v32 }
 0x2f5   :  { %2744 = vmatpush3.bf16.msra.mxu0 %v2743_v50 }
 0x2f6   :  { %2745 = vmatprep.subr.bf16.mxu0 %v2815_v32 }
 0x2f9   :  { %2747 = vmatpush3.bf16.msra.mxu0 %v2746_v28 }
 0x2fa   :  { %2748 = vmatprep.subr.bf16.mxu0 %v2815_v32 }
 0x2fd   :  { %2750 = vmatpush3.bf16.msra.mxu0 %v2749_v20 }
 0x2fe   :  { %2751 = vmatprep.subr.bf16.mxu0 %v2815_v32 }
 0x301   :  { %2753 = vmatpush3.bf16.msra.mxu0 %v2752_v18 }
 0x302   :  { %2754 = vmatprep.subr.bf16.mxu0 %v2815_v32 }
 0x304   :  { %2453 = vmatmul.mubr.f32.vlgmr.msra.gmra.mrb[2].mxu0 %v3417_v52 }
 0x305   :  { %2756 = vmatpush3.bf16.msra.mxu0 %v3137_v48  ;;  %2487 = vmatprep.mubr.msk.f32.mxu0 %vm2814_vm1, %v2813_v0  ;;  %v1823_v0 = vld [vmem:[%s3533_s6] ss:$0 sm:$0xff] }
 0x306   :  { %2757 = vmatprep.subr.bf16.mxu0 %v2815_v32 }
 0x309   :  { %2759 = vmatpush3.bf16.msra.mxu0 %v3151_v39 }
 0x30a   :  { %2760 = vmatprep.subr.bf16.mxu0 %v2815_v32 }
 0x30d   :  { %2762 = vmatpush3.bf16.msra.mxu0 %v3175_v36 }
 0x30e   :  { %2763 = vmatprep.subr.bf16.mxu0 %v2815_v32 }
 0x311   :  { %2765 = vmatpush3.bf16.msra.mxu0 %v3183_v37 }
 0x312   :  { %2766 = vmatprep.subr.bf16.mxu0 %v2815_v32 }
 0x315   :  { %2768 = vmatpush3.bf16.msra.mxu0 %v3191_v49 }
 0x316   :  { %2769 = vmatprep.subr.bf16.mxu0 %v2815_v32 }
 0x319   :  { %2771 = vmatpush3.bf16.msra.mxu0 %v3296_v47 }
 0x31a   :  { %2772 = vmatprep.subr.bf16.mxu0 %v2815_v32 }
 0x31d   :  { %2774 = vmatpush3.bf16.msra.mxu0 %v3306_v5 }
 0x31e   :  { %2775 = vmatprep.subr.bf16.mxu0 %v2815_v32 }
 0x321   :  { %2777 = vmatpush3.bf16.msra.mxu0 %v3318_v22 }
 0x324   :  { %2488 = vmatmul.mubr.f32.vlgmr.msra.gmra.mrb[2].mxu0 %v3417_v52 }
 0x3f7   :  { %v1811_v39 = vpop.f32.mrb[2].mxu0 }
 0x3f8   :  { %v2781_v48 = vadd.f32 %v1823_v0, %v1811_v39  ;;  %v2489_v36 = vpop.f32.mrb[3].mxu0 }
 0x3fa   :  { %1816 = vst.msk [vmem:[%s3534_s7] sm:$0xff] %vm1815_vm2, %v2781_v48 }

</bundles_post_ra>
